<compile_context>
chip_gen: v6e
topology: v6e:2x2x1
jax: 0.10.0
libtpu: 0.0.40
codegen_flags: <defaults>
</compile_context>

<pallas_src>
import math
from functools import partial

import jax
import jax.numpy as jnp
from jax import lax
from jax.experimental import pallas as pl
from jax.experimental.pallas import tpu as pltpu

_HIGHEST = lax.Precision.HIGHEST  # reference only


def _softmax(x, axis):
    m = jnp.max(x, axis=axis, keepdims=True)
    e = jnp.exp(x - m)
    s = jnp.sum(e, axis=axis, keepdims=True)
    # EUP approx reciprocal: separate VLIW slot, effectively free.
    return e * pl.reciprocal(s, approx=True)


def _spatial_linear_attention_kernel(x_ref, w_qkv_ref, w_out_ref, b_out_ref,
                                     o_ref, *, heads, dim_head, scale):
    # x_ref:     (TB, C, N)          TB (batch*frame) slices, channels x spatial
    # w_qkv_ref: (H, 3*D, C)         per-head [Wq; Wk; Wv] slabs (1x1 conv, no bias)
    # w_out_ref: (H, C, D)           per-head output-projection slabs
    # b_out_ref: (C, 1)              output-projection bias
    # o_ref:     (TB, C, N)
    tb, c, n = x_ref.shape
    d = dim_head
    z = tb * heads

    x = x_ref[...].astype(jnp.float32)                               # (TB, C, N)
    # Replicate each slice across heads -> single batch axis Z = TB*heads.
    xz = jnp.broadcast_to(x[:, None], (tb, heads, c, n)).reshape(z, c, n)

    # Per-head qkv projection: (Z, 3D, C) @ (Z, C, N) -> (Z, 3D, N).
    w_qkv = w_qkv_ref[...].astype(jnp.float32)                       # (H, 3D, C)
    w_qkv_z = jnp.broadcast_to(
        w_qkv[None], (tb, heads, 3 * d, c)).reshape(z, 3 * d, c)
    qkv = jnp.einsum('zoc,zcn->zon', w_qkv_z, xz,
                     preferred_element_type=jnp.float32)             # (Z, 3D, N)

    # Tile-aligned sublane slices (offsets multiples of D >= 8).
    q = qkv[:, 0 * d:1 * d, :]                                       # (Z, D, N)
    k = qkv[:, 1 * d:2 * d, :]                                       # (Z, D, N)
    v = qkv[:, 2 * d:3 * d, :]                                       # (Z, D, N)

    q = _softmax(q, axis=1)        # softmax over head-dim
    k = _softmax(k, axis=2)        # softmax over spatial

    # ctx_t[z, e, d] = sum_n v[z, e, n] * k[z, d, n]; 1/sqrt(D) folded in here
    # (equivalent to scaling q, but on a (D, D) tile instead of (D, N)).
    ctx_t = jnp.einsum('zen,zdn->zed', v, k,
                       preferred_element_type=jnp.float32) * scale   # (Z, D, D)
    # out[z, e, n] = sum_d ctx_t[z, e, d] * q[z, d, n]
    out = jnp.einsum('zed,zdn->zen', ctx_t, q,
                     preferred_element_type=jnp.float32)             # (Z, D, N)

    # Per-head output projection, then sum over heads (replaces concatenate).
    w_out = w_out_ref[...].astype(jnp.float32)                       # (H, C, D)
    w_out_z = jnp.broadcast_to(w_out[None], (tb, heads, c, d)).reshape(z, c, d)
    y_h = jnp.einsum('zcd,zdn->zcn', w_out_z, out,
                     preferred_element_type=jnp.float32)             # (Z, C, N)
    y = jnp.sum(y_h.reshape(tb, heads, c, n), axis=1)                # (TB, C, N)
    y = y + b_out_ref[...].astype(jnp.float32)[None]                 # (1, C, 1)
    o_ref[...] = y.astype(o_ref.dtype)                               # lane-dense store


def _choose_batch_tile(bf, c, n, heads, dim_head):
    hidden = heads * dim_head
    # Rough f32 working set per (b*f) slice inside the kernel: x replicated
    # over heads, qkv, softmaxed q/k + v, attention out, per-head projections.
    per_slice = (heads * c + 3 * hidden + 2 * hidden + hidden
                 + heads * c + 2 * c) * n * 4
    # ~12 MiB budget: fits v7x's 32 MiB scoped-VMEM default (64 MiB physical)
    # with double-buffered in/out blocks and headroom; trivial on v5e/v6e.
    budget = 12 * 1024 * 1024
    tb = max(1, min(bf, budget // max(per_slice, 1)))
    # Prefer a divisor of bf (no padding); among those prefer an even number
    # of grid steps (v7x's two TensorCores share the "parallel" axis), as long
    # as it does not shrink TB below half of the budgeted size.
    divisors = [t for t in range(1, tb + 1) if bf % t == 0]
    even = [t for t in divisors if (bf // t) % 2 == 0]
    for cand_list in (even, divisors):
        if cand_list and 2 * cand_list[-1] >= tb:
            return cand_list[-1]
    return tb


def spatial_linear_attention(x, w_qkv, w_out, b_out, *, heads, dim_head):
    """x: (b, c, f, h, w); w_qkv: (3*heads*dim_head, c);
    w_out: (c, heads*dim_head); b_out: (c,). Returns (b, c, f, h, w)."""
    b, c, f, h, w = x.shape
    n = h * w
    bf = b * f
    hidden = heads * dim_head
    assert w_qkv.shape == (3 * hidden, c)
    assert w_out.shape == (c, hidden)
    assert b_out.shape == (c,)
    scale = dim_head ** -0.5

    # (b, c, f, h, w) -> (b*f, c, h*w): spatial lands on the TPU lane axis.
    # TODO(synk): if producer/consumer can emit/consume this layout natively,
    # these two wrapper-side XLA transposes (full HBM passes) disappear.
    x_flat = jnp.transpose(x, (0, 2, 1, 3, 4)).reshape(bf, c, n)

    # Head-major weight slabs so the kernel batches heads without relayouts:
    # w_qkv_heads[h] = [Wq_h; Wk_h; Wv_h] -> (3D, C); w_out_heads[h] -> (C, D).
    w_qkv_heads = jnp.transpose(
        w_qkv.reshape(3, heads, dim_head, c), (1, 0, 2, 3)
    ).reshape(heads, 3 * dim_head, c)
    w_out_heads = jnp.transpose(w_out.reshape(c, heads, dim_head), (1, 0, 2))
    b_out2d = b_out.reshape(c, 1)

    tb = _choose_batch_tile(bf, c, n, heads, dim_head)
    pad = (-bf) % tb
    if pad:
        # Zero padding is numerically safe (finite softmaxes); padded slices
        # are discarded below.
        x_flat = jnp.pad(x_flat, ((0, pad), (0, 0), (0, 0)))
    num_blocks = (bf + pad) // tb

    kernel = partial(_spatial_linear_attention_kernel,
                     heads=heads, dim_head=dim_head, scale=scale)

    out_flat = pl.pallas_call(
        kernel,
        out_shape=jax.ShapeDtypeStruct((bf + pad, c, n), x.dtype),
        grid_spec=pl.GridSpec(
            grid=(num_blocks,),
            in_specs=[
                pl.BlockSpec((tb, c, n), lambda i: (i, 0, 0)),
                pl.BlockSpec((heads, 3 * dim_head, c), lambda i: (0, 0, 0)),
                pl.BlockSpec((heads, c, dim_head), lambda i: (0, 0, 0)),
                pl.BlockSpec((c, 1), lambda i: (0, 0)),
            ],
            out_specs=pl.BlockSpec((tb, c, n), lambda i: (i, 0, 0)),
        ),
        compiler_params=pltpu.CompilerParams(
            dimension_semantics=("parallel",),
            vmem_limit_bytes=32 * 1024 * 1024,
        ),
    )(x_flat, w_qkv_heads, w_out_heads, b_out2d)

    out_flat = out_flat[:bf]
    # (b*f, c, n) -> (b, c, f, h, w)
    return out_flat.reshape(b, f, c, h, w).transpose(0, 2, 1, 3, 4)
    # TODO(synk): for production h*w >= 1024-4096, add an inner "arbitrary"
    # N-tiled variant (two-pass k-softmax + VMEM ctx accumulators).


def _reference(x, w_qkv, w_out, b_out, *, heads, dim_head):
    b, c, f, h, w = x.shape
    n = h * w
    hidden = heads * dim_head
    scale = dim_head ** -0.5
    xf = jnp.transpose(x, (0, 2, 1, 3, 4)).reshape(b * f, c, n).astype(jnp.float32)
    qkv = jnp.einsum('oc,bcn->bon', w_qkv, xf, precision=_HIGHEST)
    q, k, v = jnp.split(qkv, 3, axis=1)
    q = q.reshape(b * f, heads, dim_head, n)
    k = k.reshape(b * f, heads, dim_head, n)
    v = v.reshape(b * f, heads, dim_head, n)
    q = jax.nn.softmax(q, axis=-2) * scale
    k = jax.nn.softmax(k, axis=-1)
    ctx = jnp.einsum('bhdn,bhen->bhde', k, v, precision=_HIGHEST)
    out = jnp.einsum('bhde,bhdn->bhen', ctx, q, precision=_HIGHEST)
    out = out.reshape(b * f, hidden, n)
    y = jnp.einsum('oc,bcn->bon', w_out, out, precision=_HIGHEST)
    y = y + b_out[None, :, None]
    return y.reshape(b, f, c, h, w).transpose(0, 2, 1, 3, 4)


if __name__ == "__main__":
    key = jax.random.PRNGKey(0)
    B, C, F, H, W = 2, 8, 2, 16, 16        # x: (b, c, f, h, w), n = h*w = 256
    HEADS, DIM_HEAD = 2, 16
    HIDDEN = HEADS * DIM_HEAD

    kx, kq, ko, kb = jax.random.split(key, 4)
    x = jax.random.normal(kx, (B, C, F, H, W), dtype=jnp.float32)
    w_qkv = jax.random.normal(kq, (3 * HIDDEN, C), dtype=jnp.float32) / math.sqrt(C)
    w_out = jax.random.normal(ko, (C, HIDDEN), dtype=jnp.float32) / math.sqrt(HIDDEN)
    b_out = jax.random.normal(kb, (C,), dtype=jnp.float32) * 0.1

    out = spatial_linear_attention(x, w_qkv, w_out, b_out,
                                   heads=HEADS, dim_head=DIM_HEAD)
    jax.block_until_ready(out)

    ref = _reference(x, w_qkv, w_out, b_out, heads=HEADS, dim_head=DIM_HEAD)
    assert out.shape == x.shape and out.dtype == x.dtype
    max_err = float(jnp.max(jnp.abs(out - ref)))
    # Kernel matmuls run at default MXU precision (bf16 passes, f32 accum)
    # vs. an f32-HIGHEST reference, hence the looser tolerance.
    assert jnp.allclose(out, ref, atol=2e-2, rtol=2e-2), \
        f"mismatch vs reference: max abs err {max_err}"

    print("KERNEL_OK")
</pallas_src>

<mosaic_0001>
module attributes {stable_mosaic.version = 11 : i64} {
  func.func @_spatial_linear_attention_kernel(%arg0: i32, %arg1: memref<2x8x256xf32, #tpu.memory_space<vmem>>, %arg2: memref<2x48x8xf32, #tpu.memory_space<vmem>>, %arg3: memref<2x8x16xf32, #tpu.memory_space<vmem>>, %arg4: memref<8x1xf32, #tpu.memory_space<vmem>>, %arg5: memref<2x8x256xf32, #tpu.memory_space<vmem>>) attributes {dimension_semantics = [#tpu.dimension_semantics<parallel>], iteration_bounds = array<i64: 2>, scalar_prefetch = 0 : i64, scratch_operands = 0 : i64, tpu.core_type = #tpu.core_type<tc>, window_params = [{transform_indices = @transform_0, window_bounds = array<i64: 2, 8, 256>}, {pipeline_mode = #tpu.pipeline_mode<synchronous>, transform_indices = @transform_1, window_bounds = array<i64: 2, 48, 8>}, {pipeline_mode = #tpu.pipeline_mode<synchronous>, transform_indices = @transform_2, window_bounds = array<i64: 2, 8, 16>}, {pipeline_mode = #tpu.pipeline_mode<synchronous>, transform_indices = @transform_3, window_bounds = array<i64: 8, 1>}, {transform_indices = @transform_4, window_bounds = array<i64: 2, 8, 256>}]} {
    %c0 = arith.constant 0 : index
    %c0_0 = arith.constant 0 : index
    %c0_1 = arith.constant 0 : index
    %0 = vector.load %arg1[%c0, %c0_0, %c0_1] : memref<2x8x256xf32, #tpu.memory_space<vmem>>, vector<2x8x256xf32>
    %1 = vector.shape_cast %0 : vector<2x8x256xf32> to vector<2x1x8x256xf32>
    %2 = vector.shape_cast %1 : vector<2x1x8x256xf32> to vector<2x1x8x256xf32>
    %3 = vector.broadcast %2 : vector<2x1x8x256xf32> to vector<2x2x8x256xf32>
    %4 = vector.shape_cast %3 : vector<2x2x8x256xf32> to vector<4x8x256xf32>
    %c0_2 = arith.constant 0 : index
    %c0_3 = arith.constant 0 : index
    %c0_4 = arith.constant 0 : index
    %5 = vector.load %arg2[%c0_2, %c0_3, %c0_4] : memref<2x48x8xf32, #tpu.memory_space<vmem>>, vector<2x48x8xf32>
    %6 = vector.shape_cast %5 : vector<2x48x8xf32> to vector<1x2x48x8xf32>
    %7 = vector.shape_cast %6 : vector<1x2x48x8xf32> to vector<1x2x48x8xf32>
    %8 = vector.broadcast %7 : vector<1x2x48x8xf32> to vector<2x2x48x8xf32>
    %9 = vector.shape_cast %8 : vector<2x2x48x8xf32> to vector<4x48x8xf32>
    "tpu.trace_start"() <{level = 10 : i32, message = "zoc,zcn->zon"}> : () -> ()
    %cst = arith.constant dense<0.000000e+00> : vector<4x48x256xf32>
    %10 = tpu.matmul %9, %4, %cst {dimension_numbers = #tpu.dot_dimension_numbers<[2], [1], [1], [2], [0, 0, 0, 1, 1, 2], [0], [0]>} : vector<4x48x8xf32>, vector<4x8x256xf32>, vector<4x48x256xf32> -> vector<4x48x256xf32>
    "tpu.trace_stop"() : () -> ()
    %11 = vector.extract_strided_slice %10 {offsets = [0, 0, 0], sizes = [4, 16, 256], strides = [1, 1, 1]} : vector<4x48x256xf32> to vector<4x16x256xf32>
    %12 = vector.extract_strided_slice %10 {offsets = [0, 16, 0], sizes = [4, 16, 256], strides = [1, 1, 1]} : vector<4x48x256xf32> to vector<4x16x256xf32>
    %13 = vector.extract_strided_slice %10 {offsets = [0, 32, 0], sizes = [4, 16, 256], strides = [1, 1, 1]} : vector<4x48x256xf32> to vector<4x16x256xf32>
    %cst_5 = arith.constant dense<0xFF800000> : vector<4x256xf32>
    %14 = vector.multi_reduction <maximumf>, %11, %cst_5 [1] : vector<4x16x256xf32> to vector<4x256xf32>
    %15 = vector.shape_cast %14 : vector<4x256xf32> to vector<4x1x256xf32>
    %16 = vector.broadcast %15 : vector<4x1x256xf32> to vector<4x16x256xf32>
    %17 = arith.subf %11, %16 : vector<4x16x256xf32>
    %18 = math.exp %17 : vector<4x16x256xf32>
    %cst_6 = arith.constant dense<0.000000e+00> : vector<4x256xf32>
    %19 = vector.multi_reduction <add>, %18, %cst_6 [1] : vector<4x16x256xf32> to vector<4x256xf32>
    %20 = vector.shape_cast %19 : vector<4x256xf32> to vector<4x1x256xf32>
    %21 = tpu.reciprocal %20 {approx = true} : vector<4x1x256xf32> -> vector<4x1x256xf32>
    %22 = vector.broadcast %21 : vector<4x1x256xf32> to vector<4x16x256xf32>
    %23 = arith.mulf %18, %22 : vector<4x16x256xf32>
    %cst_7 = arith.constant dense<0xFF800000> : vector<4x16xf32>
    %24 = vector.multi_reduction <maximumf>, %12, %cst_7 [2] : vector<4x16x256xf32> to vector<4x16xf32>
    %25 = vector.shape_cast %24 : vector<4x16xf32> to vector<4x16x1xf32>
    %26 = vector.broadcast %25 : vector<4x16x1xf32> to vector<4x16x256xf32>
    %27 = arith.subf %12, %26 : vector<4x16x256xf32>
    %28 = math.exp %27 : vector<4x16x256xf32>
    %cst_8 = arith.constant dense<0.000000e+00> : vector<4x16xf32>
    %29 = vector.multi_reduction <add>, %28, %cst_8 [2] : vector<4x16x256xf32> to vector<4x16xf32>
    %30 = vector.shape_cast %29 : vector<4x16xf32> to vector<4x16x1xf32>
    %31 = tpu.reciprocal %30 {approx = true} : vector<4x16x1xf32> -> vector<4x16x1xf32>
    %32 = vector.broadcast %31 : vector<4x16x1xf32> to vector<4x16x256xf32>
    %33 = arith.mulf %28, %32 : vector<4x16x256xf32>
    "tpu.trace_start"() <{level = 10 : i32, message = "zen,zdn->zed"}> : () -> ()
    %cst_9 = arith.constant dense<0.000000e+00> : vector<4x16x16xf32>
    %34 = tpu.matmul %13, %33, %cst_9 {dimension_numbers = #tpu.dot_dimension_numbers<[2], [2], [1], [1], [0, 0, 0, 1, 1, 1], [0], [0]>} : vector<4x16x256xf32>, vector<4x16x256xf32>, vector<4x16x16xf32> -> vector<4x16x16xf32>
    "tpu.trace_stop"() : () -> ()
    %cst_10 = arith.constant 2.500000e-01 : f32
    %35 = vector.broadcast %cst_10 : f32 to vector<4x16x16xf32>
    %36 = arith.mulf %34, %35 : vector<4x16x16xf32>
    "tpu.trace_start"() <{level = 10 : i32, message = "zed,zdn->zen"}> : () -> ()
    %cst_11 = arith.constant dense<0.000000e+00> : vector<4x16x256xf32>
    %37 = tpu.matmul %36, %23, %cst_11 {dimension_numbers = #tpu.dot_dimension_numbers<[2], [1], [1], [2], [0, 0, 0, 1, 1, 2], [0], [0]>} : vector<4x16x16xf32>, vector<4x16x256xf32>, vector<4x16x256xf32> -> vector<4x16x256xf32>
    "tpu.trace_stop"() : () -> ()
    %c0_12 = arith.constant 0 : index
    %c0_13 = arith.constant 0 : index
    %c0_14 = arith.constant 0 : index
    %38 = vector.load %arg3[%c0_12, %c0_13, %c0_14] : memref<2x8x16xf32, #tpu.memory_space<vmem>>, vector<2x8x16xf32>
    %39 = vector.shape_cast %38 : vector<2x8x16xf32> to vector<1x2x8x16xf32>
    %40 = vector.shape_cast %39 : vector<1x2x8x16xf32> to vector<1x2x8x16xf32>
    %41 = vector.broadcast %40 : vector<1x2x8x16xf32> to vector<2x2x8x16xf32>
    %42 = vector.shape_cast %41 : vector<2x2x8x16xf32> to vector<4x8x16xf32>
    "tpu.trace_start"() <{level = 10 : i32, message = "zcd,zdn->zcn"}> : () -> ()
    %cst_15 = arith.constant dense<0.000000e+00> : vector<4x8x256xf32>
    %43 = tpu.matmul %42, %37, %cst_15 {dimension_numbers = #tpu.dot_dimension_numbers<[2], [1], [1], [2], [0, 0, 0, 1, 1, 2], [0], [0]>} : vector<4x8x16xf32>, vector<4x16x256xf32>, vector<4x8x256xf32> -> vector<4x8x256xf32>
    "tpu.trace_stop"() : () -> ()
    %44 = vector.shape_cast %43 : vector<4x8x256xf32> to vector<2x2x8x256xf32>
    %cst_16 = arith.constant dense<0.000000e+00> : vector<2x8x256xf32>
    %45 = vector.multi_reduction <add>, %44, %cst_16 [1] : vector<2x2x8x256xf32> to vector<2x8x256xf32>
    %c0_17 = arith.constant 0 : index
    %c0_18 = arith.constant 0 : index
    %46 = vector.load %arg4[%c0_17, %c0_18] : memref<8x1xf32, #tpu.memory_space<vmem>>, vector<8x1xf32>
    %47 = vector.shape_cast %46 : vector<8x1xf32> to vector<1x8x1xf32>
    %48 = vector.broadcast %47 : vector<1x8x1xf32> to vector<2x8x256xf32>
    %49 = arith.addf %45, %48 : vector<2x8x256xf32>
    %c0_19 = arith.constant 0 : index
    %c0_20 = arith.constant 0 : index
    %c0_21 = arith.constant 0 : index
    %50 = vector.load %arg5[%c0_19, %c0_20, %c0_21] : memref<2x8x256xf32, #tpu.memory_space<vmem>>, vector<2x8x256xf32>
    tpu.vector_store %arg5[%c0_19, %c0_20, %c0_21], %49 {strides = array<i32>} : memref<2x8x256xf32, #tpu.memory_space<vmem>>, vector<2x8x256xf32>,
    return
  }
  func.func @transform_0(%arg0: i32) -> (i32, i32, i32) {
    %c0_i32 = arith.constant 0 : i32
    %c0_i32_0 = arith.constant 0 : i32
    %c0_i32_1 = arith.constant 0 : i32
    return %arg0, %c0_i32, %c0_i32_0 : i32, i32, i32
  }
  func.func @transform_1(%arg0: i32) -> (i32, i32, i32) {
    %c0_i32 = arith.constant 0 : i32
    %c0_i32_0 = arith.constant 0 : i32
    %c0_i32_1 = arith.constant 0 : i32
    %c0_i32_2 = arith.constant 0 : i32
    return %c0_i32, %c0_i32_0, %c0_i32_1 : i32, i32, i32
  }
  func.func @transform_2(%arg0: i32) -> (i32, i32, i32) {
    %c0_i32 = arith.constant 0 : i32
    %c0_i32_0 = arith.constant 0 : i32
    %c0_i32_1 = arith.constant 0 : i32
    %c0_i32_2 = arith.constant 0 : i32
    return %c0_i32, %c0_i32_0, %c0_i32_1 : i32, i32, i32
  }
  func.func @transform_3(%arg0: i32) -> (i32, i32) {
    %c0_i32 = arith.constant 0 : i32
    %c0_i32_0 = arith.constant 0 : i32
    %c0_i32_1 = arith.constant 0 : i32
    return %c0_i32, %c0_i32_0 : i32, i32
  }
  func.func @transform_4(%arg0: i32) -> (i32, i32, i32) {
    %c0_i32 = arith.constant 0 : i32
    %c0_i32_0 = arith.constant 0 : i32
    %c0_i32_1 = arith.constant 0 : i32
    return %arg0, %c0_i32, %c0_i32_0 : i32, i32, i32
  }
}

</mosaic_0001>

<bundles_post_ra>
// kernel: tpu_custom_call.1
= control target key start
LH: loop header
LB: loop body
LE: loop exit
PB: predicated region body
PF: predicated region fallthrough
CT: control target
= control target key end

     0   :  { %9 = vsyncpa [#allocation3], 0  ;;  %s2776_s0 = inlined_call_operand.vmem [shape: f32[4,8,256], index: 0, kind: input, shape index: {}]   ;;  %s2777_s1 = inlined_call_operand.vmem [shape: f32[2,48,8], index: 1, kind: input, shape index: {}]   ;;  %s2778_s2 = inlined_call_operand.vmem [shape: f32[2,8,16], index: 2, kind: input, shape index: {}]   ;;  %s2779_s3 = inlined_call_operand.vmem [shape: f32[8,1], index: 3, kind: input, shape index: {}]   ;;  %s2780_s4 = inlined_call_operand.hbm [shape: f32[4,8,256], index: 4, kind: output, shape index: {}]  }
   0x1   :  { %11 = vsyncpa [#allocation3 + $0x1], 0  ;;  %s2276_s15 = smov 0   ;;  %s2278_s16 = smov 0  }
   0x2   :  { %s2280_s17 = smov 0   ;;  %s2282_s18 = smov 0  }
   0x3 LB: > { %s2297_s19 = sadd.s32 4294967295, %s2244_s18   ;;  %s1991_s20 = sadd.s32 4294967294, %s2244_s18   ;;  %s2244_s18 = sphi %s2282_s18, %s2791_s18   ;;  %s2240_s17 = sphi %s2280_s17, %s2790_s17   ;;  %s2236_s16 = sphi %s2278_s16, %s2789_s16   ;;  %s2232_s15 = sphi %s2276_s15, %s2788_s15  }
   0x4   : > { %s2301_s21 = sadd.s32 1, %s2244_s18   ;;  %s113_s22 = sadd.s32 1, %s2240_s17 }
   0x5   : > { %s110_s23 = ssub.s32 %s2244_s18, %s2301_s21  ;;  %p123_p0 = scmp.ne.s32.totalorder %s2240_s17, %s2236_s16 }
   0x6   : > { %p111_p1 = scmp.eq.s32.totalorder %s110_s23, 0  ;;  %p124_p2 = scmp.eq.s32.totalorder %s2297_s19, 1 }
   0x7   : > { %p129_p3 = scmp.ne.s32.totalorder %s2236_s16, %s2232_s15  ;;  %p130_p4 = scmp.eq.s32.totalorder %s1991_s20, 1 }
   0x8   : > { %s2312_s24 = scalar_select %p111_p1, %s2240_s17, %s113_s22  }
   0x9   : > { %p2314_p5 = por %p124_p2, %p123_p0  ;;  %p2318_p6 = por %p130_p4, %p129_p3 }
   0xa   : > { %p1994_p7 = scmp.ge.s32.totalorder %s2244_s18, 1  ;;  %p167_p8 = scmp.lt.s32.totalorder %s2244_s18, 3 }
   0xc   : > { %p168_p9 = pnand %p1994_p7, %p167_p8 }
   0xe   : > { %171 = sbr.rel (%p168_p9) target bundleno = 1196 (0x4ac), region = 36 }
  0x13   : > { %s1996_s27 = sshll.u32 %s2297_s19, 1  ;;  %v2781_v0 = vmov 0.0   ;;  %v206_v1 = vld [vmem:[%s2777_s1] sm:$0xff]  ;;  %vm218_vm0 = vcmask 64512   ;;  %v212_v4 = vld [vmem:[%s2777_s1 + $0x30] sm:$0xff]  ;;  %v207_v7 = vld [vmem:[%s2777_s1 + $0x8] sm:$0xff] }
  0x14   : > { %p195_p10 = scmp.lt.s32.totalorder %s1996_s27, 3  ;;  %301 = vmatprep.mubr.f32.mxu0 %v2781_v0  ;;  %420 = vmatprep.mubr.f32.mxu1 %v2781_v0  ;;  %v213_v8 = vld [vmem:[%s2777_s1 + $0x38] sm:$0xff]  ;;  %v208_v9 = vld [vmem:[%s2777_s1 + $0x10] sm:$0xff]  ;;  %v214_v10 = vld [vmem:[%s2777_s1 + $0x40] sm:$0xff]  ;;  %vm1271_vm1 = vcmask 130048   ;;  %s2043_s6 = sshll.u32 %s2297_s19, 9 }
  0x15   : > { %v209_v11 = vld [vmem:[%s2777_s1 + $0x18] sm:$0xff]  ;;  %v215_v12 = vld [vmem:[%s2777_s1 + $0x48] sm:$0xff]  ;;  %v210_v13 = vld [vmem:[%s2777_s1 + $0x20] sm:$0xff]  ;;  %s2734_s9 = scalar_lea.hbm %s2780_s4, %s2043_s6  ;;  %s2248_s19 = smov [#allocation2]  }
  0x16   : > { %s2793_s27 = smov (!%p195_p10, %s1996_s27), 3  ;;  %v216_v14 = vld [vmem:[%s2777_s1 + $0x50] sm:$0xff]  ;;  %v211_v15 = vld [vmem:[%s2777_s1 + $0x28] sm:$0xff]  ;;  %v217_v16 = vld [vmem:[%s2777_s1 + $0x58] sm:$0xff]  ;;  %s2188_s12 = sshll.u32 %s2248_s19, 4  ;;  %s2189_s12 = int_to_ptr.vmem [resolvable:$false] %s2188_s12 }
  0x17   : > { %s2041_s28 = sshll.u32 %s2793_s27, 4  ;;  %s2190_s13 = scalar_lea.vmem %s2189_s12, 1024 }
  0x18   : > { %s199_s5 = scalar_lea.vmem %s2776_s0, %s2041_s28  ;;  %s191_s28 = sand.u32 1, %s2236_s16  }
  0x19   : > { %v203_v2 = vld [vmem:[%s199_s5 + $0x8] sm:$0xff]  ;;  %v202_v3 = vld [vmem:[%s199_s5] sm:$0xff]  ;;  %v205_v5 = vld [vmem:[%s199_s5 + $0x18] sm:$0xff]  ;;  %s1995_s29 = sshll.u32 %s191_s28, 5  ;;  %s2736_s10 = scalar_lea.sflag [#allocation3], %s191_s28 }
  0x1a   : > { %267 = vmatprep.subr.mxu0 %v203_v2  ;;  %386 = vmatprep.subr.mxu1 %v203_v2  ;;  %v204_v6 = vld [vmem:[%s199_s5 + $0x10] sm:$0xff]  ;;  %s193_s30 = scalar_lea.vmem [#allocation2], %s1995_s29 }
  0x1b   : > { %268 = vmatpush1.msra.mxu0 %v202_v3  ;;  %387 = vmatpush1.msra.mxu1 %v202_v3  ;;  %s1929_s5 = sshll.u32 %s193_s30, 4  ;;  %s2729_s5 = int_to_ptr.vmem [resolvable:$true] %s1929_s5 }
  0x1c   : > { %1999 = vmatmul.mubr.msk.f32.vlgmr.msra.gmra.mxu0 %vm218_vm0, %v206_v1  ;;  %2005 = vmatmul.mubr.msk.f32.vlgmr.msra.gmra.mxu1 %vm218_vm0, %v212_v4  ;;  %s2184_s11 = scalar_lea.vmem %s2729_s5, 512  ;;  %p2191_p0 = scmp.lt.s32.totalorder %s2729_s5, %s2189_s12 }
  0x1d   : > { %307 = vmatprep.mubr.f32.mxu0 %v2781_v0  ;;  %426 = vmatprep.mubr.f32.mxu1 %v2781_v0  ;;  %p2185_p11 = scmp.ne.s32.totalorder %s2729_s5, %s2184_s11  ;;  %p2192_p1 = scmp.lt.s32.totalorder %s2190_s13, %s2184_s11 }
  0x1e   : > { %487 = vmatprep.subr.mxu0 %v205_v5  ;;  %588 = vmatprep.subr.mxu1 %v205_v5 }
  0x1f   : > { %488 = vmatpush1.msra.mxu0 %v204_v6  ;;  %589 = vmatpush1.msra.mxu1 %v204_v6  ;;  %p2186_p12 = pnand %p2185_p11, %p2314_p5  ;;  %p2193_p2 = por %p2192_p1, %p2191_p0 }
  0x20   : > { %2000 = vmatmul.mubr.msk.f32.gmra.mxu0 %vm218_vm0, %v207_v7  ;;  %2006 = vmatmul.mubr.msk.f32.gmra.mxu1 %vm218_vm0, %v213_v8 }
  0x21   : > { %313 = vmatprep.mubr.f32.mxu0 %v2781_v0  ;;  %432 = vmatprep.mubr.f32.mxu1 %v2781_v0  ;;  %p2187_p13 = pneg %p2186_p12 }
  0x23   : > { %p2194_p3 = pnand %p2193_p2, %p2187_p13 }
  0x24   : > { %2001 = vmatmul.mubr.msk.f32.gmra.mxu0 %vm218_vm0, %v208_v9  ;;  %2007 = vmatmul.mubr.msk.f32.gmra.mxu1 %vm218_vm0, %v214_v10 }
  0x25   : > { %319 = vmatprep.mubr.f32.mxu0 %v2781_v0  ;;  %438 = vmatprep.mubr.f32.mxu1 %v2781_v0 }
  0x28   : > { %2002 = vmatmul.mubr.msk.f32.gmra.mxu0 %vm218_vm0, %v209_v11  ;;  %2008 = vmatmul.mubr.msk.f32.gmra.mxu1 %vm218_vm0, %v215_v12 }
  0x29   : > { %325 = vmatprep.mubr.f32.mxu0 %v2781_v0  ;;  %444 = vmatprep.mubr.f32.mxu1 %v2781_v0 }
  0x2c   : > { %2003 = vmatmul.mubr.msk.f32.gmra.mxu0 %vm218_vm0, %v210_v13  ;;  %2009 = vmatmul.mubr.msk.f32.gmra.mxu1 %vm218_vm0, %v216_v14 }
  0x2d   : > { %331 = vmatprep.mubr.f32.mxu0 %v2781_v0  ;;  %450 = vmatprep.mubr.f32.mxu1 %v2781_v0 }
  0x30   : > { %2004 = vmatmul.mubr.msk.f32.gmra.mxu0 %vm218_vm0, %v211_v15  ;;  %2010 = vmatmul.mubr.msk.f32.gmra.mxu1 %vm218_vm0, %v217_v16 }
  0x31   : > { %521 = vmatprep.mubr.f32.mxu0 %v2781_v0  ;;  %622 = vmatprep.mubr.f32.mxu1 %v2781_v0 }
  0x34   : > { %2011 = vmatmul.mubr.msk.f32.vlgmr.msra.gmra.mxu0 %vm218_vm0, %v206_v1  ;;  %2017 = vmatmul.mubr.msk.f32.vlgmr.msra.gmra.mxu1 %vm218_vm0, %v212_v4 }
  0x35   : > { %527 = vmatprep.mubr.f32.mxu0 %v2781_v0  ;;  %628 = vmatprep.mubr.f32.mxu1 %v2781_v0 }
  0x38   : > { %2012 = vmatmul.mubr.msk.f32.gmra.mxu0 %vm218_vm0, %v207_v7  ;;  %2018 = vmatmul.mubr.msk.f32.gmra.mxu1 %vm218_vm0, %v213_v8 }
  0x39   : > { %533 = vmatprep.mubr.f32.mxu0 %v2781_v0  ;;  %634 = vmatprep.mubr.f32.mxu1 %v2781_v0 }
  0x3c   : > { %2013 = vmatmul.mubr.msk.f32.gmra.mxu0 %vm218_vm0, %v208_v9  ;;  %2019 = vmatmul.mubr.msk.f32.gmra.mxu1 %vm218_vm0, %v214_v10 }
  0x3d   : > { %539 = vmatprep.mubr.f32.mxu0 %v2781_v0  ;;  %640 = vmatprep.mubr.f32.mxu1 %v2781_v0 }
  0x40   : > { %2014 = vmatmul.mubr.msk.f32.gmra.mxu0 %vm218_vm0, %v209_v11  ;;  %2020 = vmatmul.mubr.msk.f32.gmra.mxu1 %vm218_vm0, %v215_v12 }
  0x41   : > { %545 = vmatprep.mubr.f32.mxu0 %v2781_v0  ;;  %646 = vmatprep.mubr.f32.mxu1 %v2781_v0 }
  0x44   : > { %2015 = vmatmul.mubr.msk.f32.gmra.mxu0 %vm218_vm0, %v210_v13  ;;  %2021 = vmatmul.mubr.msk.f32.gmra.mxu1 %vm218_vm0, %v216_v14 }
  0x45   : > { %551 = vmatprep.mubr.f32.mxu0 %v2781_v0  ;;  %652 = vmatprep.mubr.f32.mxu1 %v2781_v0 }
  0x48   : > { %2016 = vmatmul.mubr.msk.f32.gmra.mxu0 %vm218_vm0, %v211_v15  ;;  %2022 = vmatmul.mubr.msk.f32.gmra.mxu1 %vm218_vm0, %v217_v16 }
  0xdc   : > { %v2412_v17 = vpop.f32.mrf.mxu0  ;;  %v2414_v18 = vpop.f32.mrf.mxu1 }
  0xde   : > { %v2416_v19 = vpop.f32.mrf.mxu0  ;;  %v2418_v20 = vpop.f32.mrf.mxu1 }
  0xe0   : > { %v309_v21 = vpop.f32.mrf.mxu0  ;;  %v428_v22 = vpop.f32.mrf.mxu1 }
  0xe1   : > { %v659_v23 = vmax.f32 %v2412_v17, %v309_v21  ;;  %v673_v24 = vmax.f32 %v2414_v18, %v428_v22 }
  0xe2   : > { %v2422_v25 = vpop.f32.mrf.mxu0  ;;  %v2424_v26 = vpop.f32.mrf.mxu1 }
  0xe3   : > { %v660_v27 = vrot.slane %v659_v23, 4  ;;  %v674_v28 = vrot.slane %v673_v24, 4  ;;  %v666_v29 = vmax.f32 %v2416_v19, %v2422_v25  ;;  %v680_v30 = vmax.f32 %v2418_v20, %v2424_v26 }
  0xe4   : > { %v2430_v31 = vpop.f32.mrf.mxu0  ;;  %v2432_v32 = vpop.f32.mrf.mxu1 }
  0xe5   : > { %v661_v33 = vmax.f32 %v659_v23, %v660_v27  ;;  %v675_v34 = vmax.f32 %v673_v24, %v674_v28  ;;  %v667_v35 = vrot.slane %v666_v29, 4  ;;  %v681_v36 = vrot.slane %v680_v30, 4 }
  0xe6   : > { %v2434_v37 = vpop.f32.mrf.mxu0  ;;  %v2436_v38 = vpop.f32.mrf.mxu1 }
  0xe7   : > { %v662_v39 = vrot.slane %v661_v33, 2  ;;  %v676_v40 = vrot.slane %v675_v34, 2  ;;  %v668_v41 = vmax.f32 %v666_v29, %v667_v35  ;;  %v682_v42 = vmax.f32 %v680_v30, %v681_v36 }
  0xe8   : > { %v2438_v43 = vpop.f32.mrf.mxu0  ;;  %v2440_v44 = vpop.f32.mrf.mxu1  ;;  %v843_v45 = vmax.f32 %v2430_v31, %v2434_v37  ;;  %v849_v58 = vmax.f32 %v2432_v32, %v2436_v38 }
  0xe9   : > { %v663_v46 = vmax.f32 %v661_v33, %v662_v39  ;;  %v677_v47 = vmax.f32 %v675_v34, %v676_v40  ;;  %v669_v48 = vrot.slane %v668_v41, 2  ;;  %v683_v49 = vrot.slane %v682_v42, 2 }
  0xea   : > { %844 = vmax.xlane.f32.xlu1 %v843_v45  ;;  %v2444_v50 = vpop.f32.mrf.mxu0  ;;  %v2446_v51 = vpop.f32.mrf.mxu1 }
  0xeb   : > { %v664_v52 = vrot.slane %v663_v46, 1  ;;  %v678_v53 = vrot.slane %v677_v47, 1  ;;  %v670_v54 = vmax.f32 %v668_v41, %v669_v48  ;;  %v684_v55 = vmax.f32 %v682_v42, %v683_v49 }
  0xec   : > { %v2448_v56 = vpop.f32.mrf.mxu0  ;;  %v2450_v57 = vpop.f32.mrf.mxu1  ;;  %v846_v59 = vmax.f32 %v2438_v43, %v2444_v50  ;;  %v852_v11 = vmax.f32 %v2440_v44, %v2446_v51 }
  0xed   : > { %v665_v60 = vmax.f32 %v663_v46, %v664_v52  ;;  %v679_v61 = vmax.f32 %v677_v47, %v678_v53  ;;  %v671_v62 = vrot.slane %v670_v54, 1  ;;  %v685_v63 = vrot.slane %v684_v55, 1 }
  0xee   : > { %850 = vmax.xlane.f32.xlu1 %v849_v58  ;;  %847 = vmax.xlane.f32.xlu0 %v846_v59  ;;  %v329_v1 = vpop.f32.mrf.mxu0  ;;  %v448_v2 = vpop.f32.mrf.mxu1 }
  0xef   : > { %v715_v3 = vsub.f32 %v2412_v17, %v665_v60  ;;  %v717_v4 = vsub.f32 %v309_v21, %v665_v60  ;;  %v719_v5 = vsub.f32 %v2414_v18, %v679_v61  ;;  %v721_v6 = vsub.f32 %v428_v22, %v679_v61  ;;  %1102 = vmatprep.mubr.f32.mxu1 %v448_v2 }
  0xf0   : > { %v672_v7 = vmax.f32 %v670_v54, %v671_v62  ;;  %v686_v8 = vmax.f32 %v684_v55, %v685_v63  ;;  %v2458_v9 = vpop.f32.mrf.mxu0  ;;  %v2460_v10 = vpop.f32.mrf.mxu1  ;;  %1027 = vmatprep.mubr.f32.mxu0 %v329_v1 }
  0xf1   : > { %2785 = vst [vmem:[#allocation5_spill] sm:$0xff] %v2460_v10  ;;  %v731_v12 = vmul.f32 1.442695, %v715_v3  ;;  %v735_v13 = vmul.f32 1.442695, %v717_v4 }
  0xf2   : > { %v739_v14 = vmul.f32 1.442695, %v719_v5  ;;  %v743_v15 = vmul.f32 1.442695, %v721_v6  ;;  %v716_v16 = vsub.f32 %v2416_v19, %v672_v7  ;;  %v718_v17 = vsub.f32 %v2422_v25, %v672_v7  ;;  %853 = vmax.xlane.f32.xlu0 %v852_v11  ;;  %v2467_v21 = vpop.f32.mrf.mxu0  ;;  %v2469_v22 = vpop.f32.mrf.mxu1 }
  0xf3   : > { %v720_v18 = vsub.f32 %v2418_v20, %v686_v8  ;;  %2088 = vpow2.f32 %v731_v12  ;;  %v722_v23 = vsub.f32 %v2424_v26, %v686_v8 }
  0xf4   : > { %2090 = vpow2.f32 %v735_v13  ;;  %v733_v24 = vmul.f32 1.442695, %v716_v16  ;;  %v737_v27 = vmul.f32 1.442695, %v718_v17  ;;  %v2472_v28 = vpop.f32.mrf.mxu0  ;;  %v2474_v29 = vpop.f32.mrf.mxu1 }
  0xf5   : > { %2092 = vpow2.f32 %v739_v14  ;;  %v741_v19 = vmul.f32 1.442695, %v720_v18  ;;  %v745_v25 = vmul.f32 1.442695, %v722_v23 }
  0xf6   : > { %2094 = vpow2.f32 %v743_v15  ;;  %v2476_v20 = vpop.f32.mrf.mxu0  ;;  %v2478_v30 = vpop.f32.mrf.mxu1 }
  0xf7   : > { %2096 = vpow2.f32 %v733_v24 }
  0xf8   : > { %2098 = vpow2.f32 %v737_v27  ;;  %v2480_v33 = vpop.f32.mrf.mxu0  ;;  %v2482_v26 = vpop.f32.mrf.mxu1 }
  0xf9   : > { %2100 = vpow2.f32 %v741_v19  ;;  %v687_v34 = vmax.f32 %v2472_v28, %v2480_v33  ;;  %v701_v35 = vmax.f32 %v2474_v29, %v2482_v26 }
  0xfa   : > { %2102 = vpow2.f32 %v745_v25  ;;  %v2488_v36 = vpop.f32.mrf.mxu0  ;;  %v2490_v39 = vpop.f32.mrf.mxu1 }
  0xfb   : > { %v688_v40 = vrot.slane %v687_v34, 4  ;;  %v702_v41 = vrot.slane %v701_v35, 4  ;;  %v694_v42 = vmax.f32 %v2476_v20, %v2488_v36  ;;  %v708_v45 = vmax.f32 %v2478_v30, %v2490_v39 }
  0xfc   : > { %v2496_v46 = vpop.f32.mrf.mxu0  ;;  %v2498_v47 = vpop.f32.mrf.mxu1 }
  0xfd   : > { %v689_v48 = vmax.f32 %v687_v34, %v688_v40  ;;  %v703_v49 = vmax.f32 %v701_v35, %v702_v41  ;;  %v695_v52 = vrot.slane %v694_v42, 4  ;;  %v709_v53 = vrot.slane %v708_v45, 4 }
  0xfe   : > { %v2500_v54 = vpop.f32.mrf.mxu0  ;;  %v2502_v55 = vpop.f32.mrf.mxu1 }
  0xff   : > { %v690_v58 = vrot.slane %v689_v48, 2  ;;  %v704_v59 = vrot.slane %v703_v49, 2  ;;  %v696_v60 = vmax.f32 %v694_v42, %v695_v52  ;;  %v710_v61 = vmax.f32 %v708_v45, %v709_v53 }
 0x100   : > { %v2504_v62 = vpop.eup %2088  ;;  %v2506_v63 = vpop.f32.mrf.mxu0  ;;  %v861_v13 = vmax.f32 %v2498_v47, %v2502_v55  ;;  %v855_v42 = vmax.f32 %v2496_v46, %v2500_v54 }
 0x101   : > { %v2508_v1 = vpop.f32.mrf.mxu1  ;;  %v2510_v2 = vpop.eup %2090  ;;  %v691_v3 = vmax.f32 %v689_v48, %v690_v58  ;;  %v705_v4 = vmax.f32 %v703_v49, %v704_v59  ;;  %v697_v5 = vrot.slane %v696_v60, 2  ;;  %v711_v6 = vrot.slane %v710_v61, 2 }
 0x102   : > { %v2512_v7 = vpop.eup %2092  ;;  %v763_v8 = vadd.f32 %v2510_v2, %v2504_v62  ;;  %v2516_v11 = vpop.f32.mrf.mxu0 }
 0x103   : > { %v2518_v12 = vpop.f32.mrf.mxu1  ;;  %v2522_v14 = vpop.eup %2094  ;;  %v692_v15 = vrot.slane %v691_v3, 1  ;;  %v706_v16 = vrot.slane %v705_v4, 1  ;;  %v698_v17 = vmax.f32 %v696_v60, %v697_v5  ;;  %v712_v18 = vmax.f32 %v710_v61, %v711_v6 }
 0x104   : > { %v2524_v23 = vpop.eup %2096  ;;  %v764_v24 = vrot.slane %v763_v8, 4  ;;  %v777_v27 = vadd.f32 %v2522_v14, %v2512_v7  ;;  %v864_v19 = vmax.f32 %v2508_v1, %v2518_v12  ;;  %v858_v25 = vmax.f32 %v2506_v63, %v2516_v11 }
 0x105   : > { %v2532_v34 = vpop.eup %2098  ;;  %v693_v35 = vmax.f32 %v691_v3, %v692_v15  ;;  %v707_v40 = vmax.f32 %v705_v4, %v706_v16  ;;  %v699_v41 = vrot.slane %v698_v17, 1  ;;  %v713_v53 = vrot.slane %v712_v18, 1 }
 0x106   : > { %v2536_v45 = vpop.eup %2100  ;;  %v765_v48 = vadd.f32 %v764_v24, %v763_v8  ;;  %v778_v49 = vrot.slane %v777_v27, 4  ;;  %v770_v52 = vadd.f32 %v2532_v34, %v2524_v23  ;;  %865 = vmax.xlane.f32.xlu1 %v864_v19  ;;  %859 = vmax.xlane.f32.xlu0 %v858_v25 }
 0x107   : > { %v2540_v58 = vpop.eup %2102  ;;  %v723_v59 = vsub.f32 %v2472_v28, %v693_v35  ;;  %v725_v60 = vsub.f32 %v2480_v33, %v693_v35  ;;  %v727_v61 = vsub.f32 %v2474_v29, %v707_v40  ;;  %v729_v3 = vsub.f32 %v2482_v26, %v707_v40 }
 0x108   : > { %v766_v4 = vrot.slane %v765_v48, 2  ;;  %v779_v5 = vadd.f32 %v778_v49, %v777_v27  ;;  %v771_v6 = vrot.slane %v770_v52, 4  ;;  %v784_v8 = vadd.f32 %v2540_v58, %v2536_v45 }
 0x109   : > { %v747_v15 = vmul.f32 1.442695, %v723_v59  ;;  %v751_v16 = vmul.f32 1.442695, %v725_v60  ;;  %v755_v24 = vmul.f32 1.442695, %v727_v61  ;;  %v700_v19 = vmax.f32 %v698_v17, %v699_v41 }
 0x10a   : > { %v767_v25 = vadd.f32 %v766_v4, %v765_v48  ;;  %v780_v0 = vrot.slane %v779_v5, 2  ;;  %v772_v10 = vadd.f32 %v771_v6, %v770_v52  ;;  %v785_v28 = vrot.slane %v784_v8, 4  ;;  %862 = vmax.xlane.f32.xlu1 %v861_v13  ;;  %856 = vmax.xlane.f32.xlu0 %v855_v42 }
 0x10b   : > { %2104 = vpow2.f32 %v747_v15  ;;  %v759_v29 = vmul.f32 1.442695, %v729_v3  ;;  %v724_v33 = vsub.f32 %v2476_v20, %v700_v19  ;;  %v726_v26 = vsub.f32 %v2488_v36, %v700_v19 }
 0x10c   : > { %v768_v27 = vrot.slane %v767_v25, 1  ;;  %v781_v35 = vadd.f32 %v780_v0, %v779_v5  ;;  %v773_v40 = vrot.slane %v772_v10, 2  ;;  %v786_v49 = vadd.f32 %v785_v28, %v784_v8 }
 0x10d   : > { %2106 = vpow2.f32 %v751_v16  ;;  %v749_v59 = vmul.f32 1.442695, %v724_v33  ;;  %v753_v60 = vmul.f32 1.442695, %v726_v26  ;;  %v714_v17 = vmax.f32 %v712_v18, %v713_v53 }
 0x10e   : > { %v782_v41 = vrot.slane %v781_v35, 1  ;;  %v787_v48 = vrot.slane %v786_v49, 2  ;;  %2108 = vpow2.f32 %v755_v24  ;;  %v774_v52 = vadd.f32 %v773_v40, %v772_v10 }
 0x10f   : > { %2110 = vpow2.f32 %v759_v29  ;;  %v728_v13 = vsub.f32 %v2478_v30, %v714_v17  ;;  %v730_v42 = vsub.f32 %v2490_v39, %v714_v17  ;;  %v769_v20 = vadd.f32 %v768_v27, %v767_v25 }
 0x110   : > { %2112 = vpow2.f32 %v749_v59  ;;  %v775_v36 = vrot.slane %v774_v52, 1  ;;  %v788_v61 = vadd.f32 %v787_v48, %v786_v49  ;;  %v783_v18 = vadd.f32 %v782_v41, %v781_v35 }
 0x111   : > { %2114 = vpow2.f32 %v753_v60  ;;  %v757_v0 = vmul.f32 1.442695, %v728_v13  ;;  %v761_v3 = vmul.f32 1.442695, %v730_v42 }
 0x112   : > { %v776_v4 = vadd.f32 %v775_v36, %v774_v52  ;;  %v789_v5 = vrot.slane %v788_v61, 1  ;;  %2116 = vrcp.f32 %v769_v20 }
 0x113   : > { %2118 = vpow2.f32 %v757_v0 }
 0x114   : > { %2120 = vpow2.f32 %v761_v3  ;;  %v790_v53 = vadd.f32 %v789_v5, %v788_v61 }
 0x115   : > { %2122 = vrcp.f32 %v776_v4 }
 0x116   : > { %2124 = vrcp.f32 %v790_v53 }
 0x117   : > { %2126 = vrcp.f32 %v783_v18 }
 0x118   : > { %v2105_v10 = vpop.eup %2104 }
 0x11a   : > { %v2107_v30 = vpop.eup %2106 }
 0x11b   : > { %v2109_v39 = vpop.eup %2108  ;;  %v791_v6 = vadd.f32 %v2107_v30, %v2105_v10 }
 0x11c   : > { %v2111_v8 = vpop.eup %2110 }
 0x11d   : > { %v2113_v15 = vpop.eup %2112  ;;  %v792_v16 = vrot.slane %v791_v6, 4  ;;  %v805_v24 = vadd.f32 %v2111_v8, %v2109_v39 }
 0x11e   : > { %v2115_v19 = vpop.eup %2114 }
 0x11f   : > { %v2117_v25 = vpop.eup %2116  ;;  %v793_v28 = vadd.f32 %v792_v16, %v791_v6  ;;  %v806_v29 = vrot.slane %v805_v24, 4  ;;  %v798_v33 = vadd.f32 %v2115_v19, %v2113_v15 }
 0x120   : > { %v2119_v26 = vpop.eup %2118  ;;  %v2553_v27 = vmul.f32 %v2117_v25, %v2510_v2  ;;  %v2556_v35 = vmul.f32 %v2117_v25, %v2504_v62 }
 0x121   : > { %v2121_v40 = vpop.eup %2120  ;;  %v794_v49 = vrot.slane %v793_v28, 2  ;;  %v807_v59 = vadd.f32 %v806_v29, %v805_v24  ;;  %v799_v60 = vrot.slane %v798_v33, 4 }
 0x122   : > { %v2123_v17 = vpop.eup %2122  ;;  %v812_v41 = vadd.f32 %v2121_v40, %v2119_v26 }
 0x123   : > { %v2125_v48 = vpop.eup %2124  ;;  %v795_v52 = vadd.f32 %v794_v49, %v793_v28  ;;  %v808_v13 = vrot.slane %v807_v59, 2  ;;  %v800_v42 = vadd.f32 %v799_v60, %v798_v33  ;;  %v2559_v20 = vmul.f32 %v2123_v17, %v2532_v34 }
 0x124   : > { %v2127_v36 = vpop.eup %2126  ;;  %v813_v61 = vrot.slane %v812_v41, 4  ;;  %v2562_v2 = vmul.f32 %v2125_v48, %v2540_v58  ;;  %v2565_v62 = vmul.f32 %v2123_v17, %v2524_v23  ;;  %v2568_v0 = vmul.f32 %v2125_v48, %v2536_v45 }
 0x125   : > { %v796_v3 = vrot.slane %v795_v52, 1  ;;  %v809_v4 = vadd.f32 %v808_v13, %v807_v59  ;;  %v801_v5 = vrot.slane %v800_v42, 2  ;;  %v2571_v18 = vmul.f32 %v2127_v36, %v2522_v14 }
 0x126   : > { %v814_v53 = vadd.f32 %v813_v61, %v812_v41  ;;  %v2574_v34 = vmul.f32 %v2127_v36, %v2512_v7 }
 0x127   : > { %v810_v6 = vrot.slane %v809_v4, 1  ;;  %v802_v16 = vadd.f32 %v801_v5, %v800_v42  ;;  %v797_v58 = vadd.f32 %v796_v3, %v795_v52 }
 0x128   : > { %v815_v24 = vrot.slane %v814_v53, 2 }
 0x129   : > { %v803_v25 = vrot.slane %v802_v16, 1  ;;  %2128 = vrcp.f32 %v797_v58  ;;  %v811_v23 = vadd.f32 %v810_v6, %v809_v4 }
 0x12a   : > { %v816_v28 = vadd.f32 %v815_v24, %v814_v53 }
 0x12b   : > { %v804_v45 = vadd.f32 %v803_v25, %v802_v16  ;;  %2130 = vrcp.f32 %v811_v23 }
 0x12c   : > { %v817_v29 = vrot.slane %v816_v28, 1 }
 0x12d   : > { %2132 = vrcp.f32 %v804_v45 }
 0x12e   : > { %v818_v33 = vadd.f32 %v817_v29, %v816_v28 }
 0x130   : > { %2134 = vrcp.f32 %v818_v33 }
 0x136   : > { %v2129_v14 = vpop.eup %2128 }
 0x137   : > { %v2576_v49 = vmul.f32 %v2129_v14, %v2107_v30  ;;  %v2578_v59 = vmul.f32 %v2129_v14, %v2105_v10 }
 0x138   : > { %v2131_v7 = vpop.eup %2130 }
 0x139   : > { %v2580_v60 = vmul.f32 %v2131_v7, %v2111_v8  ;;  %v2582_v17 = vmul.f32 %v2131_v7, %v2109_v39 }
 0x13a   : > { %v2133_v41 = vpop.eup %2132 }
 0x13b   : > { %v2584_v48 = vmul.f32 %v2133_v41, %v2115_v19  ;;  %v2586_v52 = vmul.f32 %v2133_v41, %v2113_v15 }
 0x13d   : > { %v2135_v13 = vpop.eup %2134 }
 0x13e   : > { %v2588_v42 = vmul.f32 %v2135_v13, %v2121_v40  ;;  %v2590_v36 = vmul.f32 %v2135_v13, %v2119_v26 }
 0x173   : > { %v845_v61 = vpop.xlane.xlu1 %844 }
 0x174   : > { %v867_v30 = vsub.f32 %v2430_v31, %v845_v61  ;;  %v868_v10 = vsub.f32 %v2434_v37, %v845_v61 }
 0x176   : > { %v883_v4 = vmul.f32 1.442695, %v867_v30  ;;  %v885_v5 = vmul.f32 1.442695, %v868_v10 }
 0x177   : > { %v851_v3 = vpop.xlane.xlu1 %850  ;;  %v848_v8 = vpop.xlane.xlu0 %847 }
 0x178   : > { %v869_v39 = vsub.f32 %v2438_v43, %v848_v8  ;;  %v870_v19 = vsub.f32 %v2444_v50, %v848_v8  ;;  %v871_v15 = vsub.f32 %v2432_v32, %v851_v3  ;;  %v872_v40 = vsub.f32 %v2436_v38, %v851_v3 }
 0x179   : > { %2136 = vpow2.f32 %v883_v4 }
 0x17a   : > { %v887_v53 = vmul.f32 1.442695, %v869_v39  ;;  %v889_v26 = vmul.f32 1.442695, %v870_v19  ;;  %2138 = vpow2.f32 %v885_v5  ;;  %v891_v16 = vmul.f32 1.442695, %v871_v15 }
 0x17b   : > { %v854_v6 = vpop.xlane.xlu0 %853  ;;  %v893_v24 = vmul.f32 1.442695, %v872_v40 }
 0x17c   : > { %v873_v31 = vsub.f32 %v2440_v44, %v854_v6  ;;  %v874_v37 = vsub.f32 %v2446_v51, %v854_v6  ;;  %2140 = vpow2.f32 %v887_v53 }
 0x17d   : > { %2142 = vpow2.f32 %v889_v26 }
 0x17e   : > { %v895_v58 = vmul.f32 1.442695, %v873_v31  ;;  %v897_v43 = vmul.f32 1.442695, %v874_v37 }
 0x180   : > { %2144 = vpow2.f32 %v895_v58 }
 0x181   : > { %2146 = vpow2.f32 %v897_v43 }
 0x182   : > { %2148 = vpow2.f32 %v891_v16 }
 0x183   : > { %2150 = vpow2.f32 %v893_v24 }
 0x186   : > { %v2600_v32 = vpop.eup %2136 }
 0x187   : > { %v2602_v38 = vpop.eup %2138 }
 0x188   : > { %v915_v30 = vadd.f32 %v2602_v38, %v2600_v32 }
 0x189   : > { %v2604_v50 = vpop.eup %2140 }
 0x18a   : > { %v2606_v44 = vpop.eup %2142 }
 0x18b   : > { %v918_v25 = vadd.f32 %v2606_v44, %v2604_v50 }
 0x18d   : > { %v2608_v51 = vpop.eup %2144  ;;  %919 = vadd.xlane.f32.xlu0 %v918_v25 }
 0x18e   : > { %v2612_v23 = vpop.eup %2146 }
 0x18f   : > { %v2614_v28 = vpop.eup %2148  ;;  %v866_v45 = vpop.xlane.xlu1 %865  ;;  %v924_v33 = vadd.f32 %v2612_v23, %v2608_v51 }
 0x190   : > { %v860_v29 = vpop.xlane.xlu0 %859  ;;  %v2618_v14 = vpop.eup %2150  ;;  %v881_v7 = vsub.f32 %v2508_v1, %v866_v45  ;;  %v882_v41 = vsub.f32 %v2518_v12, %v866_v45 }
 0x191   : > { %v877_v13 = vsub.f32 %v2506_v63, %v860_v29  ;;  %v878_v61 = vsub.f32 %v2516_v11, %v860_v29  ;;  %925 = vadd.xlane.f32.xlu1 %v924_v33  ;;  %916 = vadd.xlane.f32.xlu0 %v915_v30  ;;  %v921_v1 = vadd.f32 %v2618_v14, %v2614_v28 }
 0x192   : > { %v911_v10 = vmul.f32 1.442695, %v881_v7  ;;  %v913_v3 = vmul.f32 1.442695, %v882_v41 }
 0x193   : > { %v903_v8 = vmul.f32 1.442695, %v877_v13  ;;  %v905_v4 = vmul.f32 1.442695, %v878_v61  ;;  %v863_v39 = vpop.xlane.xlu1 %862 }
 0x194   : > { %v857_v5 = vpop.xlane.xlu0 %856  ;;  %2152 = vpow2.f32 %v911_v10  ;;  %v879_v12 = vsub.f32 %v2498_v47, %v863_v39  ;;  %v880_v63 = vsub.f32 %v2502_v55, %v863_v39 }
 0x195   : > { %v875_v11 = vsub.f32 %v2496_v46, %v857_v5  ;;  %2154 = vpow2.f32 %v913_v3  ;;  %v876_v19 = vsub.f32 %v2500_v54, %v857_v5  ;;  %922 = vadd.xlane.f32.xlu1 %v921_v1 }
 0x196   : > { %2156 = vpow2.f32 %v903_v8  ;;  %v907_v15 = vmul.f32 1.442695, %v879_v12  ;;  %v909_v53 = vmul.f32 1.442695, %v880_v63  ;;  %v2786_v63 = vld [vmem:[#allocation5_spill] sm:$0xff] }
 0x197   : > { %v899_v40 = vmul.f32 1.442695, %v875_v11  ;;  %2158 = vpow2.f32 %v905_v4  ;;  %v901_v26 = vmul.f32 1.442695, %v876_v19 }
 0x198   : > { %2160 = vpow2.f32 %v907_v15 }
 0x199   : > { %2162 = vpow2.f32 %v909_v53 }
 0x19a   : > { %2164 = vpow2.f32 %v899_v40 }
 0x19b   : > { %2166 = vpow2.f32 %v901_v26 }
 0x1a1   : > { %v2632_v6 = vpop.eup %2152 }
 0x1a2   : > { %v2634_v47 = vpop.eup %2154 }
 0x1a3   : > { %v2636_v55 = vpop.eup %2156  ;;  %v936_v46 = vadd.f32 %v2634_v47, %v2632_v6 }
 0x1a4   : > { %v2640_v54 = vpop.eup %2158 }
 0x1a5   : > { %v2642_v31 = vpop.eup %2160  ;;  %937 = vadd.xlane.f32.xlu1 %v936_v46  ;;  %v930_v37 = vadd.f32 %v2640_v54, %v2636_v55 }
 0x1a6   : > { %v2646_v16 = vpop.eup %2162 }
 0x1a7   : > { %v2648_v58 = vpop.eup %2164  ;;  %931 = vadd.xlane.f32.xlu0 %v930_v37  ;;  %v933_v43 = vadd.f32 %v2646_v16, %v2642_v31 }
 0x1a8   : > { %v2652_v24 = vpop.eup %2166 }
 0x1a9   : > { %934 = vadd.xlane.f32.xlu1 %v933_v43  ;;  %v927_v25 = vadd.f32 %v2652_v24, %v2648_v58 }
 0x1ab   : > { %928 = vadd.xlane.f32.xlu0 %v927_v25 }
 0x216   : > { %v920_v45 = vpop.xlane.xlu0 %919 }
 0x217   : > { %2168 = vrcp.f32 %v920_v45 }
 0x21a   : > { %v926_v29 = vpop.xlane.xlu1 %925  ;;  %v917_v33 = vpop.xlane.xlu0 %916 }
 0x21b   : > { %2170 = vrcp.f32 %v926_v29 }
 0x21c   : > { %2172 = vrcp.f32 %v917_v33  ;;  %v1900_v33 = vld [vmem:[%s2779_s3] sm:$0xff] }
 0x21e   : > { %v923_v7 = vpop.xlane.xlu1 %922 }
 0x21f   : > { %2174 = vrcp.f32 %v923_v7  ;;  %v2247_v7 = vmov 0  }
 0x220   : > { %2087 = vset.pattern.permute.xlu0 %v2247_v7 }
 0x221   : > { %1903 = vperm.xlu0 %2087, %v1900_v33  }
 0x224   : > { %v2169_v41 = vpop.eup %2168 }
 0x225   : > { %v950_v13 = vmul.f32 %v2169_v41, %v2606_v44  ;;  %v949_v61 = vmul.f32 %v2169_v41, %v2604_v50 }
 0x227   : > { %991 = vmatprep.subr.mxu0 %v950_v13 }
 0x228   : > { %v2171_v30 = vpop.eup %2170  ;;  %992 = vmatpush1.xpose.msra.mxu0 %v949_v61 }
 0x229   : > { %v954_v10 = vmul.f32 %v2171_v30, %v2612_v23  ;;  %v953_v3 = vmul.f32 %v2171_v30, %v2608_v51  ;;  %v2173_v8 = vpop.eup %2172  ;;  %v547_v23 = vpop.f32.mrf.mxu0 }
 0x22a   : > { %v948_v4 = vmul.f32 %v2173_v8, %v2602_v38  ;;  %v947_v39 = vmul.f32 %v2173_v8, %v2600_v32  ;;  %v648_v38 = vpop.f32.mrf.mxu1 }
 0x22b   : > { %1066 = vmatprep.subr.mxu1 %v954_v10 }
 0x22c   : > { %v2175_v5 = vpop.eup %2174  ;;  %1067 = vmatpush1.xpose.msra.mxu1 %v953_v3  ;;  %993 = vmatprep.subr.mxu0 %v948_v4 }
 0x22d   : > { %v952_v44 = vmul.f32 %v2175_v5, %v2618_v14  ;;  %v951_v50 = vmul.f32 %v2175_v5, %v2614_v28  ;;  %994 = vmatpush1.xpose.msra.mxu0 %v947_v39  ;;  %v549_v14 = vpop.f32.mrf.mxu0  ;;  %v650_v28 = vpop.f32.mrf.mxu1  ;;  %v1604_v39 = vld [vmem:[%s2778_s2] sm:$0xff]  ;;  %v1605_v5 = vld [vmem:[%s2778_s2 + $0x8] sm:$0xff] }
 0x22e   : > { %v938_v1 = vpop.xlane.xlu1 %937 }
 0x22f   : > { %2176 = vrcp.f32 %v938_v1  ;;  %1068 = vmatprep.subr.mxu1 %v952_v44  ;;  %v654_v40 = vpop.f32.mrf.mxu1  ;;  %v553_v46 = vpop.f32.mrf.mxu0 }
 0x230   : > { %v932_v51 = vpop.xlane.xlu0 %931  ;;  %1069 = vmatpush1.xpose.msra.mxu1 %v951_v50  ;;  %1028 = vmatmul.mubr.f32.vlgmr.msra.gmra.mxu0 %v2448_v56 }
 0x231   : > { %2178 = vrcp.f32 %v932_v51  ;;  %1032 = vmatprep.mubr.f32.mxu0 %v2467_v21 }
 0x232   : > { %v935_v32 = vpop.xlane.xlu1 %934 }
 0x233   : > { %2180 = vrcp.f32 %v935_v32  ;;  %1103 = vmatmul.mubr.f32.vlgmr.msra.gmra.mxu1 %v2450_v57 }
 0x234   : > { %v929_v12 = vpop.xlane.xlu0 %928  ;;  %1107 = vmatprep.mubr.f32.mxu1 %v2469_v22  ;;  %1033 = vmatmul.mubr.f32.gmra.mxu0 %v2458_v9 }
 0x235   : > { %2182 = vrcp.f32 %v929_v12  ;;  %1177 = vmatprep.mubr.f32.mxu0 %v549_v14 }
 0x237   : > { %1108 = vmatmul.mubr.f32.gmra.mxu1 %v2786_v63 }
 0x238   : > { %1252 = vmatprep.mubr.f32.mxu1 %v650_v28 }
 0x23c   : > { %v2177_v56 = vpop.eup %2176 }
 0x23d   : > { %v962_v11 = vmul.f32 %v2177_v56, %v2634_v47  ;;  %v961_v21 = vmul.f32 %v2177_v56, %v2632_v6 }
 0x23e   : > { %v2179_v19 = vpop.eup %2178 }
 0x23f   : > { %v958_v57 = vmul.f32 %v2179_v19, %v2640_v54  ;;  %1216 = vmatprep.subr.mxu1 %v962_v11  ;;  %v957_v15 = vmul.f32 %v2179_v19, %v2636_v55  ;;  %v656_v55 = vpop.f32.mrf.mxu1  ;;  %v555_v54 = vpop.f32.mrf.mxu0 }
 0x240   : > { %v2181_v22 = vpop.eup %2180  ;;  %1217 = vmatpush1.xpose.msra.mxu1 %v961_v21 }
 0x241   : > { %1141 = vmatprep.subr.mxu0 %v958_v57  ;;  %v960_v9 = vmul.f32 %v2181_v22, %v2646_v16  ;;  %v959_v53 = vmul.f32 %v2181_v22, %v2642_v31 }
 0x242   : > { %v2183_v26 = vpop.eup %2182  ;;  %1142 = vmatpush1.xpose.msra.mxu0 %v957_v15 }
 0x243   : > { %v956_v47 = vmul.f32 %v2183_v26, %v2652_v24  ;;  %1218 = vmatprep.subr.mxu1 %v960_v9  ;;  %v955_v6 = vmul.f32 %v2183_v26, %v2648_v58 }
 0x244   : > { %1219 = vmatpush1.xpose.msra.mxu1 %v959_v53 }
 0x245   : > { %1143 = vmatprep.subr.mxu0 %v956_v47  ;;  %1389 = vmatprep.subr.mxu1 %v2562_v2 }
 0x246   : > { %1144 = vmatpush1.xpose.msra.mxu0 %v955_v6 }
 0x247   : > { %1306 = vmatprep.subr.mxu0 %v2559_v20  ;;  %1253 = vmatmul.mubr.f32.vlgmr.msra.gmra.mxu1 %v648_v38  ;;  %v2787_v20 = vmov 0.0  }
 0x248   : > { %1390 = vmatpush1.msra.mxu1 %v2571_v18  ;;  %1257 = vmatprep.mubr.f32.mxu1 %v656_v55 }
 0x249   : > { %1178 = vmatmul.mubr.f32.vlgmr.msra.gmra.mxu0 %v547_v23  ;;  %1391 = vmatprep.subr.mxu1 %v2568_v0 }
 0x24a   : > { %1307 = vmatpush1.msra.mxu0 %v2553_v27  ;;  %1182 = vmatprep.mubr.f32.mxu0 %v555_v54 }
 0x24b   : > { %1308 = vmatprep.subr.mxu0 %v2565_v62  ;;  %1392 = vmatpush1.msra.mxu1 %v2574_v34 }
 0x24c   : > { %1309 = vmatpush1.msra.mxu0 %v2556_v35  ;;  %1258 = vmatmul.mubr.f32.gmra.mxu1 %v654_v40 }
 0x24d   : > { %1183 = vmatmul.mubr.f32.gmra.mxu0 %v553_v46  ;;  %1472 = vmatprep.subr.mxu0 %v2584_v48 }
 0x24e   : > { %1555 = vmatprep.subr.mxu1 %v2588_v42  ;;  %1342 = vmatprep.mubr.f32.mxu0 %v2787_v20 }
 0x24f   : > { %1425 = vmatprep.mubr.f32.mxu1 %v2787_v20 }
 0x29c   : > { %v1904_v28 = vpop.permute.xlu0 %1903 }
 0x2f0   : > { %v1029_v2 = vpop.f32.mrf.mxu0 }
 0x2f1   : > { %v1263_v27 = vmul.f32 0.25, %v1029_v2 }
 0x2f2   : > { %v1031_v0 = vpop.f32.mrf.mxu0 }
 0x2f3   : > { %v1104_v18 = vpop.f32.mrf.mxu1  ;;  %2023 = vmatmul.mubr.msk.f32.vlgmr.msra.gmra.mxu0 %vm1271_vm1, %v1263_v27 }
 0x2f4   : > { %v1265_v62 = vmul.f32 0.25, %v1104_v18  ;;  %1473 = vmatpush1.msra.mxu0 %v2576_v49  ;;  %v1034_v35 = vpop.f32.mrf.mxu0  ;;  %1348 = vmatprep.mubr.f32.mxu0 %v2787_v20 }
 0x2f5   : > { %v1106_v34 = vpop.f32.mrf.mxu1  ;;  %v1264_v48 = vmul.f32 0.25, %v1034_v35  ;;  %1474 = vmatprep.subr.mxu0 %v2586_v52 }
 0x2f6   : > { %2025 = vmatmul.mubr.msk.f32.vlgmr.msra.gmra.mxu1 %vm1271_vm1, %v1265_v62  ;;  %1475 = vmatpush1.msra.mxu0 %v2578_v59  ;;  %v1036_v42 = vpop.f32.mrf.mxu0 }
 0x2f7   : > { %1556 = vmatpush1.msra.mxu1 %v2580_v60  ;;  %v1109_v31 = vpop.f32.mrf.mxu1  ;;  %2024 = vmatmul.mubr.msk.f32.gmra.mxu0 %vm1271_vm1, %v1264_v48 }
 0x2f8   : > { %v1266_v37 = vmul.f32 0.25, %v1109_v31  ;;  %1557 = vmatprep.subr.mxu1 %v2590_v36  ;;  %1431 = vmatprep.mubr.f32.mxu1 %v2787_v20 }
 0x2f9   : > { %1558 = vmatpush1.msra.mxu1 %v2582_v17  ;;  %v1111_v49 = vpop.f32.mrf.mxu1  ;;  %1508 = vmatprep.mubr.f32.mxu0 %v2787_v20 }
 0x2fa   : > { %2026 = vmatmul.mubr.msk.f32.gmra.mxu1 %vm1271_vm1, %v1266_v37 }
 0x2fb   : > { %1591 = vmatprep.mubr.f32.mxu1 %v2787_v20 }
 0x307   : > { %v1254_v59 = vpop.f32.mrf.mxu1 }
 0x308   : > { %v1269_v52 = vmul.f32 0.25, %v1254_v59 }
 0x309   : > { %v1179_v60 = vpop.f32.mrf.mxu0  ;;  %v1256_v16 = vpop.f32.mrf.mxu1 }
 0x30a   : > { %v1267_v58 = vmul.f32 0.25, %v1179_v60  ;;  %2029 = vmatmul.mubr.msk.f32.vlgmr.msra.gmra.mxu1 %vm1271_vm1, %v1269_v52 }
 0x30b   : > { %v1181_v43 = vpop.f32.mrf.mxu0  ;;  %1597 = vmatprep.mubr.f32.mxu1 %v2787_v20 }
 0x30c   : > { %2027 = vmatmul.mubr.msk.f32.vlgmr.msra.gmra.mxu0 %vm1271_vm1, %v1267_v58  ;;  %v1259_v17 = vpop.f32.mrf.mxu1 }
 0x30d   : > { %v1184_v36 = vpop.f32.mrf.mxu0  ;;  %v1270_v24 = vmul.f32 0.25, %v1259_v17  ;;  %1514 = vmatprep.mubr.f32.mxu0 %v2787_v20 }
 0x30e   : > { %v1268_v25 = vmul.f32 0.25, %v1184_v36  ;;  %v1261_v45 = vpop.f32.mrf.mxu1 }
 0x30f   : > { %v1186_v29 = vpop.f32.mrf.mxu0  ;;  %2030 = vmatmul.mubr.msk.f32.gmra.mxu1 %vm1271_vm1, %v1270_v24 }
 0x310   : > { %2028 = vmatmul.mubr.msk.f32.gmra.mxu0 %vm1271_vm1, %v1268_v25  ;;  %1747 = vmatprep.mubr.f32.mxu1 %v2787_v20 }
 0x311   : > { %1673 = vmatprep.mubr.f32.mxu0 %v2787_v20 }
 0x3b3   : > { %v1344_v41 = vpop.f32.mrf.mxu0 }
 0x3b5   : > { %v1346_v13 = vpop.f32.mrf.mxu0 }
 0x3b6   : > { %v1427_v61 = vpop.f32.mrf.mxu1 }
 0x3b7   : > { %v1350_v30 = vpop.f32.mrf.mxu0 }
 0x3b8   : > { %v1429_v10 = vpop.f32.mrf.mxu1 }
 0x3b9   : > { %v1352_v3 = vpop.f32.mrf.mxu0 }
 0x3ba   : > { %v1433_v8 = vpop.f32.mrf.mxu1  ;;  %1637 = vmatprep.subr.mxu0 %v1352_v3 }
 0x3bb   : > { %1638 = vmatpush1.msra.mxu0 %v1350_v30 }
 0x3bc   : > { %v1435_v4 = vpop.f32.mrf.mxu1  ;;  %1639 = vmatprep.subr.mxu0 %v1346_v13 }
 0x3bd   : > { %1711 = vmatprep.subr.mxu1 %v1435_v4  ;;  %1640 = vmatpush1.msra.mxu0 %v1344_v41 }
 0x3be   : > { %1712 = vmatpush1.msra.mxu1 %v1433_v8  ;;  %2031 = vmatmul.mubr.msk.f32.vlgmr.msra.gmra.mxu0 %vm1271_vm1, %v1604_v39 }
 0x3bf   : > { %1713 = vmatprep.subr.mxu1 %v1429_v10  ;;  %1818 = vmatprep.mubr.f32.mxu0 %v2787_v20 }
 0x3c0   : > { %1714 = vmatpush1.msra.mxu1 %v1427_v61 }
 0x3c1   : > { %2032 = vmatmul.mubr.msk.f32.vlgmr.msra.gmra.mxu1 %vm1271_vm1, %v1605_v5 }
 0x3c2   : > { %1889 = vmatprep.mubr.f32.mxu1 %v2787_v20 }
 0x3ca   : > { %v1593_v44 = vpop.f32.mrf.mxu1 }
 0x3cc   : > { %v1510_v50 = vpop.f32.mrf.mxu0  ;;  %v1595_v1 = vpop.f32.mrf.mxu1 }
 0x3ce   : > { %v1512_v23 = vpop.f32.mrf.mxu0 }
 0x3cf   : > { %v1599_v51 = vpop.f32.mrf.mxu1 }
 0x3d0   : > { %v1516_v38 = vpop.f32.mrf.mxu0 }
 0x3d1   : > { %v1601_v32 = vpop.f32.mrf.mxu1 }
 0x3d2   : > { %v1518_v14 = vpop.f32.mrf.mxu0  ;;  %1853 = vmatprep.subr.mxu1 %v1601_v32 }
 0x3d3   : > { %1782 = vmatprep.subr.mxu0 %v1518_v14  ;;  %1854 = vmatpush1.msra.mxu1 %v1599_v51 }
 0x3d4   : > { %1783 = vmatpush1.msra.mxu0 %v1516_v38  ;;  %1855 = vmatprep.subr.mxu1 %v1595_v1 }
 0x3d5   : > { %1784 = vmatprep.subr.mxu0 %v1512_v23  ;;  %1856 = vmatpush1.msra.mxu1 %v1593_v44 }
 0x3d6   : > { %1785 = vmatpush1.msra.mxu0 %v1510_v50  ;;  %2034 = vmatmul.mubr.msk.f32.vlgmr.msra.gmra.mxu1 %vm1271_vm1, %v1605_v5 }
 0x3d7   : > { %2033 = vmatmul.mubr.msk.f32.vlgmr.msra.gmra.mxu0 %vm1271_vm1, %v1604_v39 }
 0x47e   : > { %v1675_v12 = vpop.f32.mrf.mxu0 }
 0x480   : > { %v1677_v56 = vpop.f32.mrf.mxu0 }
 0x481   : > { %v1749_v63 = vpop.f32.mrf.mxu1 }
 0x482   : > { %v1896_v11 = vadd.f32 %v1749_v63, %v1675_v12 }
 0x483   : > { %v1751_v21 = vpop.f32.mrf.mxu1 }
 0x484   : > { %v1897_v19 = vadd.f32 %v1751_v21, %v1677_v56  ;;  %v1906_v57 = vadd.f32 %v1904_v28, %v1896_v11 }
 0x486   : > { %v1907_v15 = vadd.f32 %v1904_v28, %v1897_v19  ;;  %1910 = vst [vmem:[%s193_s30] sm:$0xff] %v1906_v57 }
 0x488   : > { %1911 = vst [vmem:[%s193_s30 + $0x8] sm:$0xff] %v1907_v15 }
 0x496   : > { %v1891_v22 = vpop.f32.mrf.mxu1 }
 0x497   : > { %v1820_v9 = vpop.f32.mrf.mxu0 }
 0x498   : > { %v1898_v53 = vadd.f32 %v1891_v22, %v1820_v9  ;;  %v1893_v40 = vpop.f32.mrf.mxu1 }
 0x499   : > { %v1822_v26 = vpop.f32.mrf.mxu0 }
 0x49a   : > { %v1908_v47 = vadd.f32 %v1904_v28, %v1898_v53  ;;  %v1899_v6 = vadd.f32 %v1893_v40, %v1822_v26 }
 0x49c   : > { %1912 = vst [vmem:[%s193_s30 + $0x10] sm:$0xff] %v1908_v47  ;;  %v1909_v46 = vadd.f32 %v1904_v28, %v1899_v6 }
 0x49e   : > { %1913 = vst [vmem:[%s193_s30 + $0x18] sm:$0xff] %v1909_v46 }
 0x49f   : > { %2197 = shalt.err (!%p2194_p3)
}
 0x4a0   : > { %s2198_s14 = scalar_lea.hbm %s2734_s9, 512  ;;  %s2202_s23 = scalar_lea.hbm %s2780_s4, 1024 }
 0x4a1   : > { %p2199_p4 = scmp.ne.s32.totalorder %s2734_s9, %s2198_s14  ;;  %p2203_p9 = scmp.lt.s32.totalorder %s2734_s9, %s2780_s4 }
 0x4a2   : > { %p2204_p10 = scmp.lt.s32.totalorder %s2202_s23, %s2198_s14 }
 0x4a3   : > { %p2200_p7 = pnand %p2199_p4, %p2314_p5 }
 0x4a4   : > { %p2205_p11 = por %p2204_p10, %p2203_p9 }
 0x4a5   : > { %p2201_p8 = pneg %p2200_p7 }
 0x4a7   : > { %p2206_p12 = pnand %p2205_p11, %p2201_p8 }
 0x4a9   : > { %2209 = shalt.err (!%p2206_p12)
}
 0x4aa   : > { %s2249_s29 = smov 256   ;;  %s2250_s30 = smov 16  }
 0x4ab   : > { %2044 = dma.vmem_to_hbm [thread:$0]  (%p2314_p5), %s2729_s5, 512, %s2734_s9, %s2736_s10, %s2249_s29, %s2249_s29, %s2250_s30  }
 0x4ac PF: > { %p2050_p13 = scmp.ge.s32.totalorder %s2244_s18, 2  ;;  %s1944_s6 = sand.u32 1, %s2232_s15  }
 0x4ad   : > { %s1945_s7 = scalar_lea.sflag [#allocation3], %s1944_s6 }
 0x4ae   : > { %p2047_p0 = pnand %p2050_p13, %p2318_p6 }
 0x4b0   : > { %p2048_p1 = pneg %p2047_p0 }
 0x4b2   : > { %2227 = dma.done.wait (%p2048_p1), %s1945_s7, 512  }
 0x4b3   : > { %2229 = vsyncadd (%p2048_p1), %s1945_s7, 4294966784  ;;  %p14_p2 = scmp.ge.s32.totalorder %s2301_s21, 4   ;;  %s2788_s15 = smov %s2236_s16 }
 0x4b4   : > { %s2789_s16 = smov %s2240_s17  ;;  %s2790_s17 = smov %s2312_s24 }
 0x4b5   : > { %s2791_s18 = smov %s2301_s21  ;;  %16 = sbr.rel (!%p14_p2) target bundleno = 3 (0x3), region = 71 }
 0x4ba   :  { %1950 = vsyncpa [#allocation3], 1 }
 0x4bb   :  { %1952 = vsyncpa [#allocation3 + $0x1], 1 }

</bundles_post_ra>
